<compile_context>
chip_gen: v5e
topology: v5e:2x2
jax: 0.10.0
libtpu: 0.0.40
codegen_flags: <defaults>
</compile_context>

<pallas_src>
import jax
import jax.numpy as jnp
from jax.experimental import pallas as pl
from jax.experimental.pallas import tpu as pltpu

MAX_TILE_B = 1024   # batch rows per grid step (perf review: sweep 512-2048)
OUT_PAD = 128       # lane-dense padded width for the final matmul only
_SUBLANE = 8


def _round_up(v, m):
    return ((v + m - 1) // m) * m


def _mlp_kernel(x_ref,
                w1_ref, b1_ref,
                w2_ref, b2_ref,
                w3_ref, b3_ref,
                w4_ref, b4_ref,
                w5_ref, b5_ref,
                o_ref):
    """Fused 5-layer MLP forward on one (tile_b, in_dim) row tile.

    Matmuls: f32 operands, f32 MXU accumulation (kernel is mem/step-overhead
    bound, so f32 is free and matches the f32 PyTorch module).
    Bias add / ReLU: f32 on the VPU.
    The final layer is computed at OUT_PAD (128) lane-dense columns; only the
    first 2 (real) logit columns are stored to the (tile_b, 2) output block.
    """

    def layer(h, w_ref, b_ref, relu):
        y = jnp.dot(h, w_ref[...], preferred_element_type=jnp.float32) + b_ref[...]
        return jnp.maximum(y, 0.0) if relu else y

    h = x_ref[...]                        # (tile_b, in_dim) f32
    h = layer(h, w1_ref, b1_ref, True)
    h = layer(h, w2_ref, b2_ref, True)
    h = layer(h, w3_ref, b3_ref, True)
    h = layer(h, w4_ref, b4_ref, True)
    out = layer(h, w5_ref, b5_ref, False)             # (tile_b, OUT_PAD) f32
    o_ref[...] = out[:, :o_ref.shape[1]].astype(o_ref.dtype)   # only real logits hit HBM


def _prepare_params(params):
    """Keep weights/biases f32; biases reshaped to (1, out).  The final layer
    is zero-padded to OUT_PAD output columns (padded logits are exactly zero
    and never stored)."""
    flat = []
    n = len(params)
    for idx, (w, b) in enumerate(params):
        w = w.astype(jnp.float32)
        b2 = b.reshape(1, -1).astype(jnp.float32)
        if idx == n - 1:
            pad = OUT_PAD - w.shape[1]
            w = jnp.pad(w, ((0, 0), (0, pad)))
            b2 = jnp.pad(b2, ((0, 0), (0, pad)))
        flat.append(w)
        flat.append(b2)
    return flat


def _pick_tile_b(batch):
    """Largest practical batch tile (amortize per-step overhead), multiple of 8
    (sublane), and — for non-trivial batches — small enough that the grid has
    >= 2 steps so v7x's two TensorCores both get work."""
    tile_b = min(MAX_TILE_B, _round_up(batch, _SUBLANE))
    if batch > 2 * _SUBLANE and pl.cdiv(batch, tile_b) < 2:
        tile_b = _round_up(pl.cdiv(batch, 2), _SUBLANE)
    return tile_b


@jax.jit
def mal_rl_agent_forward(x, params):
    """x: (B, input_size) f32.  params: list of (W, b) with W as (in, out)."""
    B, in_dim = x.shape
    hidden = params[0][0].shape[1]
    out_dim = params[-1][0].shape[1]          # 2

    x = x.astype(jnp.float32)                 # no batch padding: partial last
                                              # block is handled by Pallas
    flat_params = _prepare_params(params)

    tile_b = _pick_tile_b(B)
    grid = (pl.cdiv(B, tile_b),)

    # x is tiled over the batch; weights/biases are full-array blocks with a
    # constant block index (VMEM-resident across the whole grid, no re-DMA).
    in_specs = [pl.BlockSpec((tile_b, in_dim), lambda i: (i, 0))]
    for p in flat_params:
        in_specs.append(pl.BlockSpec(p.shape, lambda i: (0, 0)))

    out_specs = pl.BlockSpec((tile_b, out_dim), lambda i: (i, 0))

    # Advisory cost estimate (tiny kernel).
    layer_dims = [(in_dim, hidden)] + [(hidden, hidden)] * 3 + [(hidden, OUT_PAD)]
    flops = 2 * grid[0] * tile_b * sum(m * n for m, n in layer_dims)
    bytes_accessed = (int(x.size) * 4
                      + sum(int(p.size) * 4 for p in flat_params)
                      + B * out_dim * 4)
    cost = pl.CostEstimate(flops=flops, transcendentals=0,
                           bytes_accessed=bytes_accessed)

    out = pl.pallas_call(
        _mlp_kernel,
        out_shape=jax.ShapeDtypeStruct((B, out_dim), jnp.float32),
        grid=grid,
        in_specs=in_specs,
        out_specs=out_specs,
        compiler_params=pltpu.CompilerParams(
            dimension_semantics=("parallel",)),
        cost_estimate=cost,
    )(x, *flat_params)
    return out


def init_params(key, input_size, hidden_size):
    """Deterministic init matching nn.Linear shapes (weights stored transposed: (in, out))."""
    dims = [(input_size, hidden_size),
            (hidden_size, hidden_size),
            (hidden_size, hidden_size),
            (hidden_size, hidden_size),
            (hidden_size, 2)]
    params = []
    for (fan_in, fan_out) in dims:
        key, kw, kb = jax.random.split(key, 3)
        bound = 1.0 / (fan_in ** 0.5)   # same bound as PyTorch Linear default init
        w = jax.random.uniform(kw, (fan_in, fan_out), jnp.float32, -bound, bound)
        b = jax.random.uniform(kb, (fan_out,), jnp.float32, -bound, bound)
        params.append((w, b))
    return params


def _reference_forward_f32(x, params):
    h = x.astype(jnp.float32)
    for i, (w, b) in enumerate(params):
        h = h @ w + b
        if i < len(params) - 1:
            h = jnp.maximum(h, 0.0)
    return h


if __name__ == "__main__":
    key = jax.random.PRNGKey(0)
    k_in, k_param, k_in2 = jax.random.split(key, 3)

    batch = 8
    input_size = 16
    hidden_size = 32

    x = jax.random.normal(k_in, (batch, input_size), jnp.float32)
    params = init_params(k_param, input_size, hidden_size)

    out = jax.block_until_ready(mal_rl_agent_forward(x, params))
    assert out.shape == (batch, 2), out.shape
    ref = _reference_forward_f32(x, params)
    assert jnp.allclose(out, ref, atol=2e-2, rtol=2e-2), "mismatch vs f32 reference (small batch)"

    # Ragged batch: exercises the no-pad partial last block and the >=2-step
    # grid path (v7x dual TensorCore).
    batch2 = 300
    x2 = jax.random.normal(k_in2, (batch2, input_size), jnp.float32)
    out2 = jax.block_until_ready(mal_rl_agent_forward(x2, params))
    assert out2.shape == (batch2, 2), out2.shape
    ref2 = _reference_forward_f32(x2, params)
    assert jnp.allclose(out2, ref2, atol=2e-2, rtol=2e-2), "mismatch vs f32 reference (ragged batch)"

    # TODO(synk): the .sample() method (Normal rsample + log-prob) is host-side
    # policy logic, not part of forward(); it is intentionally not in the kernel.
    print("KERNEL_OK")
</pallas_src>

<mosaic_0001>
module attributes {stable_mosaic.version = 11 : i64} {
  func.func @_mlp_kernel(%arg0: i32, %arg1: memref<8x16xf32, #tpu.memory_space<vmem>>, %arg2: memref<16x32xf32, #tpu.memory_space<vmem>>, %arg3: memref<1x32xf32, #tpu.memory_space<vmem>>, %arg4: memref<32x32xf32, #tpu.memory_space<vmem>>, %arg5: memref<1x32xf32, #tpu.memory_space<vmem>>, %arg6: memref<32x32xf32, #tpu.memory_space<vmem>>, %arg7: memref<1x32xf32, #tpu.memory_space<vmem>>, %arg8: memref<32x32xf32, #tpu.memory_space<vmem>>, %arg9: memref<1x32xf32, #tpu.memory_space<vmem>>, %arg10: memref<32x128xf32, #tpu.memory_space<vmem>>, %arg11: memref<1x128xf32, #tpu.memory_space<vmem>>, %arg12: memref<8x2xf32, #tpu.memory_space<vmem>>) attributes {dimension_semantics = [#tpu.dimension_semantics<parallel>], iteration_bounds = array<i64: 1>, scalar_prefetch = 0 : i64, scratch_operands = 0 : i64, tpu.core_type = #tpu.core_type<tc>, window_params = [{transform_indices = @transform_0, window_bounds = array<i64: 8, 16>}, {pipeline_mode = #tpu.pipeline_mode<synchronous>, transform_indices = @transform_1, window_bounds = array<i64: 16, 32>}, {pipeline_mode = #tpu.pipeline_mode<synchronous>, transform_indices = @transform_2, window_bounds = array<i64: 1, 32>}, {pipeline_mode = #tpu.pipeline_mode<synchronous>, transform_indices = @transform_3, window_bounds = array<i64: 32, 32>}, {pipeline_mode = #tpu.pipeline_mode<synchronous>, transform_indices = @transform_4, window_bounds = array<i64: 1, 32>}, {pipeline_mode = #tpu.pipeline_mode<synchronous>, transform_indices = @transform_5, window_bounds = array<i64: 32, 32>}, {pipeline_mode = #tpu.pipeline_mode<synchronous>, transform_indices = @transform_6, window_bounds = array<i64: 1, 32>}, {pipeline_mode = #tpu.pipeline_mode<synchronous>, transform_indices = @transform_7, window_bounds = array<i64: 32, 32>}, {pipeline_mode = #tpu.pipeline_mode<synchronous>, transform_indices = @transform_8, window_bounds = array<i64: 1, 32>}, {pipeline_mode = #tpu.pipeline_mode<synchronous>, transform_indices = @transform_9, window_bounds = array<i64: 32, 128>}, {pipeline_mode = #tpu.pipeline_mode<synchronous>, transform_indices = @transform_10, window_bounds = array<i64: 1, 128>}, {transform_indices = @transform_11, window_bounds = array<i64: 8, 2>}]} {
    %c0 = arith.constant 0 : index
    %c0_0 = arith.constant 0 : index
    %0 = vector.load %arg1[%c0, %c0_0] : memref<8x16xf32, #tpu.memory_space<vmem>>, vector<8x16xf32>
    %c0_1 = arith.constant 0 : index
    %c0_2 = arith.constant 0 : index
    %1 = vector.load %arg2[%c0_1, %c0_2] : memref<16x32xf32, #tpu.memory_space<vmem>>, vector<16x32xf32>
    %cst = arith.constant dense<0.000000e+00> : vector<8x32xf32>
    %2 = tpu.matmul %0, %1, %cst {dimension_numbers = #tpu.dot_dimension_numbers<[1], [0], [0], [1], [0, 0, 1, 1], [], []>} : vector<8x16xf32>, vector<16x32xf32>, vector<8x32xf32> -> vector<8x32xf32>
    %c0_3 = arith.constant 0 : index
    %c0_4 = arith.constant 0 : index
    %3 = vector.load %arg3[%c0_3, %c0_4] : memref<1x32xf32, #tpu.memory_space<vmem>>, vector<1x32xf32>
    %4 = vector.broadcast %3 : vector<1x32xf32> to vector<8x32xf32>
    %5 = arith.addf %2, %4 : vector<8x32xf32>
    %cst_5 = arith.constant 0.000000e+00 : f32
    %6 = vector.broadcast %cst_5 : f32 to vector<8x32xf32>
    %7 = arith.maximumf %5, %6 : vector<8x32xf32>
    %c0_6 = arith.constant 0 : index
    %c0_7 = arith.constant 0 : index
    %8 = vector.load %arg4[%c0_6, %c0_7] : memref<32x32xf32, #tpu.memory_space<vmem>>, vector<32x32xf32>
    %cst_8 = arith.constant dense<0.000000e+00> : vector<8x32xf32>
    %9 = tpu.matmul %7, %8, %cst_8 {dimension_numbers = #tpu.dot_dimension_numbers<[1], [0], [0], [1], [0, 0, 1, 1], [], []>} : vector<8x32xf32>, vector<32x32xf32>, vector<8x32xf32> -> vector<8x32xf32>
    %c0_9 = arith.constant 0 : index
    %c0_10 = arith.constant 0 : index
    %10 = vector.load %arg5[%c0_9, %c0_10] : memref<1x32xf32, #tpu.memory_space<vmem>>, vector<1x32xf32>
    %11 = vector.broadcast %10 : vector<1x32xf32> to vector<8x32xf32>
    %12 = arith.addf %9, %11 : vector<8x32xf32>
    %cst_11 = arith.constant 0.000000e+00 : f32
    %13 = vector.broadcast %cst_11 : f32 to vector<8x32xf32>
    %14 = arith.maximumf %12, %13 : vector<8x32xf32>
    %c0_12 = arith.constant 0 : index
    %c0_13 = arith.constant 0 : index
    %15 = vector.load %arg6[%c0_12, %c0_13] : memref<32x32xf32, #tpu.memory_space<vmem>>, vector<32x32xf32>
    %cst_14 = arith.constant dense<0.000000e+00> : vector<8x32xf32>
    %16 = tpu.matmul %14, %15, %cst_14 {dimension_numbers = #tpu.dot_dimension_numbers<[1], [0], [0], [1], [0, 0, 1, 1], [], []>} : vector<8x32xf32>, vector<32x32xf32>, vector<8x32xf32> -> vector<8x32xf32>
    %c0_15 = arith.constant 0 : index
    %c0_16 = arith.constant 0 : index
    %17 = vector.load %arg7[%c0_15, %c0_16] : memref<1x32xf32, #tpu.memory_space<vmem>>, vector<1x32xf32>
    %18 = vector.broadcast %17 : vector<1x32xf32> to vector<8x32xf32>
    %19 = arith.addf %16, %18 : vector<8x32xf32>
    %cst_17 = arith.constant 0.000000e+00 : f32
    %20 = vector.broadcast %cst_17 : f32 to vector<8x32xf32>
    %21 = arith.maximumf %19, %20 : vector<8x32xf32>
    %c0_18 = arith.constant 0 : index
    %c0_19 = arith.constant 0 : index
    %22 = vector.load %arg8[%c0_18, %c0_19] : memref<32x32xf32, #tpu.memory_space<vmem>>, vector<32x32xf32>
    %cst_20 = arith.constant dense<0.000000e+00> : vector<8x32xf32>
    %23 = tpu.matmul %21, %22, %cst_20 {dimension_numbers = #tpu.dot_dimension_numbers<[1], [0], [0], [1], [0, 0, 1, 1], [], []>} : vector<8x32xf32>, vector<32x32xf32>, vector<8x32xf32> -> vector<8x32xf32>
    %c0_21 = arith.constant 0 : index
    %c0_22 = arith.constant 0 : index
    %24 = vector.load %arg9[%c0_21, %c0_22] : memref<1x32xf32, #tpu.memory_space<vmem>>, vector<1x32xf32>
    %25 = vector.broadcast %24 : vector<1x32xf32> to vector<8x32xf32>
    %26 = arith.addf %23, %25 : vector<8x32xf32>
    %cst_23 = arith.constant 0.000000e+00 : f32
    %27 = vector.broadcast %cst_23 : f32 to vector<8x32xf32>
    %28 = arith.maximumf %26, %27 : vector<8x32xf32>
    %c0_24 = arith.constant 0 : index
    %c0_25 = arith.constant 0 : index
    %29 = vector.load %arg10[%c0_24, %c0_25] : memref<32x128xf32, #tpu.memory_space<vmem>>, vector<32x128xf32>
    %cst_26 = arith.constant dense<0.000000e+00> : vector<8x128xf32>
    %30 = tpu.matmul %28, %29, %cst_26 {dimension_numbers = #tpu.dot_dimension_numbers<[1], [0], [0], [1], [0, 0, 1, 1], [], []>} : vector<8x32xf32>, vector<32x128xf32>, vector<8x128xf32> -> vector<8x128xf32>
    %c0_27 = arith.constant 0 : index
    %c0_28 = arith.constant 0 : index
    %31 = vector.load %arg11[%c0_27, %c0_28] : memref<1x128xf32, #tpu.memory_space<vmem>>, vector<1x128xf32>
    %32 = vector.broadcast %31 : vector<1x128xf32> to vector<8x128xf32>
    %33 = arith.addf %30, %32 : vector<8x128xf32>
    %34 = vector.extract_strided_slice %33 {offsets = [0, 0], sizes = [8, 2], strides = [1, 1]} : vector<8x128xf32> to vector<8x2xf32>
    %c0_29 = arith.constant 0 : index
    %c0_30 = arith.constant 0 : index
    %35 = vector.load %arg12[%c0_29, %c0_30] : memref<8x2xf32, #tpu.memory_space<vmem>>, vector<8x2xf32>
    tpu.vector_store %arg12[%c0_29, %c0_30], %34 {strides = array<i32>} : memref<8x2xf32, #tpu.memory_space<vmem>>, vector<8x2xf32>,
    return
  }
  func.func @transform_0(%arg0: i32) -> (i32, i32) {
    %c0_i32 = arith.constant 0 : i32
    %c0_i32_0 = arith.constant 0 : i32
    return %arg0, %c0_i32 : i32, i32
  }
  func.func @transform_1(%arg0: i32) -> (i32, i32) {
    %c0_i32 = arith.constant 0 : i32
    %c0_i32_0 = arith.constant 0 : i32
    %c0_i32_1 = arith.constant 0 : i32
    return %c0_i32, %c0_i32_0 : i32, i32
  }
  func.func @transform_2(%arg0: i32) -> (i32, i32) {
    %c0_i32 = arith.constant 0 : i32
    %c0_i32_0 = arith.constant 0 : i32
    %c0_i32_1 = arith.constant 0 : i32
    return %c0_i32, %c0_i32_0 : i32, i32
  }
  func.func @transform_3(%arg0: i32) -> (i32, i32) {
    %c0_i32 = arith.constant 0 : i32
    %c0_i32_0 = arith.constant 0 : i32
    %c0_i32_1 = arith.constant 0 : i32
    return %c0_i32, %c0_i32_0 : i32, i32
  }
  func.func @transform_4(%arg0: i32) -> (i32, i32) {
    %c0_i32 = arith.constant 0 : i32
    %c0_i32_0 = arith.constant 0 : i32
    %c0_i32_1 = arith.constant 0 : i32
    return %c0_i32, %c0_i32_0 : i32, i32
  }
  func.func @transform_5(%arg0: i32) -> (i32, i32) {
    %c0_i32 = arith.constant 0 : i32
    %c0_i32_0 = arith.constant 0 : i32
    %c0_i32_1 = arith.constant 0 : i32
    return %c0_i32, %c0_i32_0 : i32, i32
  }
  func.func @transform_6(%arg0: i32) -> (i32, i32) {
    %c0_i32 = arith.constant 0 : i32
    %c0_i32_0 = arith.constant 0 : i32
    %c0_i32_1 = arith.constant 0 : i32
    return %c0_i32, %c0_i32_0 : i32, i32
  }
  func.func @transform_7(%arg0: i32) -> (i32, i32) {
    %c0_i32 = arith.constant 0 : i32
    %c0_i32_0 = arith.constant 0 : i32
    %c0_i32_1 = arith.constant 0 : i32
    return %c0_i32, %c0_i32_0 : i32, i32
  }
  func.func @transform_8(%arg0: i32) -> (i32, i32) {
    %c0_i32 = arith.constant 0 : i32
    %c0_i32_0 = arith.constant 0 : i32
    %c0_i32_1 = arith.constant 0 : i32
    return %c0_i32, %c0_i32_0 : i32, i32
  }
  func.func @transform_9(%arg0: i32) -> (i32, i32) {
    %c0_i32 = arith.constant 0 : i32
    %c0_i32_0 = arith.constant 0 : i32
    %c0_i32_1 = arith.constant 0 : i32
    return %c0_i32, %c0_i32_0 : i32, i32
  }
  func.func @transform_10(%arg0: i32) -> (i32, i32) {
    %c0_i32 = arith.constant 0 : i32
    %c0_i32_0 = arith.constant 0 : i32
    %c0_i32_1 = arith.constant 0 : i32
    return %c0_i32, %c0_i32_0 : i32, i32
  }
  func.func @transform_11(%arg0: i32) -> (i32, i32) {
    %c0_i32 = arith.constant 0 : i32
    %c0_i32_0 = arith.constant 0 : i32
    return %arg0, %c0_i32 : i32, i32
  }
}

</mosaic_0001>

<bundles_post_ra>
// kernel: mal_rl_agent_forward.1
= control target key start
LH: loop header
LB: loop body
LE: loop exit
PB: predicated region body
PF: predicated region fallthrough
CT: control target
= control target key end

     0   :  { %16 = vsyncpa [#allocation3], 0  ;;  %s260_s20 = smov [#allocation2]   ;;  %s261_s22 = smov 128   ;;  %s399_s0 = inlined_call_operand.vmem [shape: f32[8,16], index: 0, kind: input, shape index: {}]   ;;  %s400_s1 = inlined_call_operand.hbm [shape: f32[16,32], index: 1, kind: input, shape index: {}]   ;;  %s401_s2 = inlined_call_operand.vmem [shape: f32[1,32], index: 2, kind: input, shape index: {}]   ;;  %s402_s3 = inlined_call_operand.vmem [shape: f32[32,32], index: 3, kind: input, shape index: {}]   ;;  %s403_s4 = inlined_call_operand.vmem [shape: f32[1,32], index: 4, kind: input, shape index: {}]   ;;  %s404_s5 = inlined_call_operand.vmem [shape: f32[32,32], index: 5, kind: input, shape index: {}]   ;;  %s405_s6 = inlined_call_operand.vmem [shape: f32[1,32], index: 6, kind: input, shape index: {}]   ;;  %s406_s7 = inlined_call_operand.vmem [shape: f32[32,32], index: 7, kind: input, shape index: {}]   ;;  %s407_s8 = inlined_call_operand.vmem [shape: f32[1,32], index: 8, kind: input, shape index: {}]   ;;  %s408_s9 = inlined_call_operand.vmem [shape: f32[32,128], index: 9, kind: input, shape index: {}]   ;;  %s409_s10 = inlined_call_operand.vmem [shape: f32[1,128], index: 10, kind: input, shape index: {}]   ;;  %s410_s11 = inlined_call_operand.vmem [shape: f32[8,2], index: 11, kind: output, shape index: {}]  }
   0x1   :  { %s23_s19 = sshll.u32 %s400_s1, 4  ;;  %s25_s21 = sshll.u32 %s260_s20, 4  ;;  %s24_s19 = int_to_ptr.hbm [resolvable:$true] %s23_s19  ;;  %s26_s21 = int_to_ptr.vmem [resolvable:$true] %s25_s21 }
   0x2   :  { %s262_s23 = smov 8  }
   0x3   :  { %31 = dma.hbm_to_vmem [thread:$0]  %s24_s19, 256, %s26_s21, [#allocation3], %s261_s22, %s261_s22, %s262_s23  }
   0x4   :  { %258 = dma.done.wait [#allocation3], 256  }
   0x5   :  { %259 = vsyncadd [#allocation3], 4294967040  ;;  %v56_v0 = vld [vmem:[#allocation2 + $0x8] sm:$0xff]  ;;  %v55_v1 = vld [vmem:[#allocation2] sm:$0xff]  ;;  %vm61_vm0 = vcmask 130048   ;;  %vm94_vm1 = vcmask 261120  }
   0x6   :  { %79 = vmatpush.msra.mxu0 %v56_v0  ;;  %v54_v2 = vld [vmem:[%s399_s0] sm:$0xff]  ;;  %v89_v3 = vld [vmem:[%s402_s3 + $0x18] sm:$0xff]  ;;  %v88_v4 = vld [vmem:[%s402_s3 + $0x10] sm:$0xff]  ;;  %vm214_vm2 = vcmask 15360  }
   0x7   :  { %110 = vmatpush.msra.mxu1 %v89_v3  ;;  %v87_v5 = vld [vmem:[%s402_s3 + $0x8] sm:$0xff]  ;;  %v86_v6 = vld [vmem:[%s402_s3] sm:$0xff]  ;;  %v122_v7 = vld [vmem:[%s404_s5 + $0x18] sm:$0xff] }
   0x8   :  { %80 = vmatpush.msra.mxu0 %v55_v1  ;;  %142 = vmatpush.msra.mxu2 %v122_v7  ;;  %v229_v8 = vld [vmem:[%s401_s2] ss:$0 sm:$0xff]  ;;  %v121_v12 = vld [vmem:[%s404_s5 + $0x10] sm:$0xff]  ;;  %v120_v13 = vld [vmem:[%s404_s5 + $0x8] sm:$0xff] }
   0x9   :  { %221 = vmatmul.msk.f32.vlgmr.msra.gmra.mxu0 %vm61_vm0, %v54_v2  ;;  %111 = vmatpush.msra.mxu1 %v88_v4  ;;  %v119_v14 = vld [vmem:[%s404_s5] sm:$0xff]  ;;  %v154_v15 = vld [vmem:[%s406_s7 + $0x18] sm:$0xff]  ;;  %v153_v20 = vld [vmem:[%s406_s7 + $0x10] sm:$0xff] }
   0xa   :  { %143 = vmatpush.msra.mxu2 %v121_v12  ;;  %174 = vmatpush.msra.mxu3 %v154_v15  ;;  %v230_v16 = vld [vmem:[%s403_s4] ss:$0 sm:$0xff]  ;;  %v152_v21 = vld [vmem:[%s406_s7 + $0x8] sm:$0xff]  ;;  %v186_v23 = vld [vmem:[%s408_s9 + $0x18] sm:$0xff] }
   0xb   :  { %112 = vmatpush.msra.mxu1 %v87_v5  ;;  %v151_v22 = vld [vmem:[%s406_s7] sm:$0xff]  ;;  %v185_v24 = vld [vmem:[%s408_s9 + $0x10] sm:$0xff]  ;;  %206 = vmatpush.msrb.mxu0 %v186_v23  ;;  %v184_v29 = vld [vmem:[%s408_s9 + $0x8] sm:$0xff] }
   0xc   :  { %144 = vmatpush.msra.mxu2 %v120_v13  ;;  %175 = vmatpush.msra.mxu3 %v153_v20  ;;  %v231_v25 = vld [vmem:[%s405_s6] ss:$0 sm:$0xff] }
   0xd   :  { %113 = vmatpush.msra.mxu1 %v86_v6  ;;  %207 = vmatpush.msrb.mxu0 %v185_v24  ;;  %v183_v30 = vld [vmem:[%s408_s9] sm:$0xff] }
   0xe   :  { %145 = vmatpush.msra.mxu2 %v119_v14  ;;  %176 = vmatpush.msra.mxu3 %v152_v21  ;;  %v232_v31 = vld [vmem:[%s407_s8] ss:$0 sm:$0xff] }
   0xf   :  { %208 = vmatpush.msrb.mxu0 %v184_v29  ;;  %v233_v35 = vld [vmem:[%s409_s10] ss:$0 sm:$0xff] }
  0x10   :  { %177 = vmatpush.msra.mxu3 %v151_v22 }
  0x11   :  { %209 = vmatpush.msrb.mxu0 %v183_v30 }
  0x86   :  { %v82_v9 = vpop.f32.mrf.mxu0 }
  0x87   :  { %v83_v10 = vadd.f32 %v229_v8, %v82_v9 }
  0x89   :  { %v85_v11 = vmax.f32 %v83_v10, 0.0 }
  0x8b   :  { %222 = vmatmul.msk.f32.vlgmr.msra.gmra.mxu1 %vm94_vm1, %v85_v11 }
 0x108   :  { %v115_v17 = vpop.f32.mrf.mxu1 }
 0x109   :  { %v116_v18 = vadd.f32 %v230_v16, %v115_v17 }
 0x10b   :  { %v118_v19 = vmax.f32 %v116_v18, 0.0 }
 0x10d   :  { %223 = vmatmul.msk.f32.vlgmr.msra.gmra.mxu2 %vm94_vm1, %v118_v19 }
 0x190   :  { %v147_v26 = vpop.f32.mrf.mxu2 }
 0x191   :  { %v148_v27 = vadd.f32 %v231_v25, %v147_v26 }
 0x193   :  { %v150_v28 = vmax.f32 %v148_v27, 0.0 }
 0x195   :  { %224 = vmatmul.msk.f32.vlgmr.msra.gmra.mxu3 %vm94_vm1, %v150_v28 }
 0x218   :  { %v179_v32 = vpop.f32.mrf.mxu3 }
 0x219   :  { %v180_v33 = vadd.f32 %v232_v31, %v179_v32 }
 0x21b   :  { %v182_v34 = vmax.f32 %v180_v33, 0.0 }
 0x21d   :  { %225 = vmatmul.msk.f32.vlgmr.msrb.gmra.mxu0 %vm94_vm1, %v182_v34 }
 0x29a   :  { %v211_v36 = vpop.f32.mrf.mxu0 }
 0x29b   :  { %v212_v37 = vadd.f32 %v233_v35, %v211_v36 }
 0x29d   :  { %215 = vst.msk [vmem:[%s410_s11] sm:$0xff] %vm214_vm2, %v212_v37 }
 0x29e   :  { %220 = vsyncpa [#allocation3], 1 }

</bundles_post_ra>
